<compile_context>
chip_gen: v7x
topology: tpu7x:2x2x1
jax: 0.10.0
libtpu: 0.0.40
codegen_flags: <defaults>
</compile_context>

<pallas_src>
import functools

import jax
import jax.numpy as jnp
from jax.experimental import pallas as pl
from jax.experimental.pallas import tpu as pltpu


EPSILON = 0.1  # module default


def _ls_ce_kernel(preds_ref, tgt_ref, out_ref, *, n_rows, eps):
    # preds_ref: (TB, C)    native-dtype VMEM tile for this batch tile
    # tgt_ref  : (B_pad, 1) int32 VMEM, resident (same block index every step)
    # out_ref  : (1, 1)     f32 per-tile partial sum
    i = pl.program_id(0)

    x = preds_ref[...]                                              # (TB, C) native
    tb, c = x.shape

    # row statistics on the native tile (max is exact; sums accumulate in f32)
    m = jnp.max(x, axis=-1, keepdims=True).astype(jnp.float32)      # (TB, 1)
    sx = jnp.sum(x, axis=-1, keepdims=True, dtype=jnp.float32)      # (TB, 1)

    # x[row, target[row]] via one-hot select + lane reduce (no vector gather
    # on TPU). A (1, C) iota broadcasts against the (TB, 1) targets, so no
    # (TB, C) int32 tile is ever materialized.
    row0 = i * tb
    if tb % 8 == 0:
        row0 = pl.multiple_of(row0, 8)
    tgt = tgt_ref[pl.ds(row0, tb), :]                               # (TB, 1) int32
    col = jax.lax.broadcasted_iota(jnp.int32, (1, c), 1)            # (1, C)
    xt = jnp.sum(jnp.where(col == tgt, x, jnp.zeros((), x.dtype)),
                 axis=-1, keepdims=True, dtype=jnp.float32)         # (TB, 1)

    # f32 only for the exp / lse pass
    xf = x.astype(jnp.float32)
    s = jnp.sum(jnp.exp(xf - m), axis=-1, keepdims=True)            # (TB, 1)
    lse = m + jnp.log(s)

    nll = lse - xt                                    # -log_preds[i, t_i]
    loss_all = jnp.float32(c) * lse - sx              # -sum(log_preds, -1)
    per_row = (1.0 - eps) * nll + (eps / c) * loss_all              # (TB, 1)

    # mask padded rows of the last (partial) tile; keep this a select (not a
    # multiply-by-mask) so garbage / NaN in padded preds rows cannot propagate.
    row = i * tb + jax.lax.broadcasted_iota(jnp.int32, (tb, 1), 0)
    per_row = jnp.where(row < n_rows, per_row, 0.0)

    out_ref[...] = jnp.sum(per_row).reshape(1, 1)


def _choose_block_rows(B, C, itemsize, vmem_cap):
    """Batch tile: ~3 MiB native data per block, working set <= VMEM/4."""
    # per-element VMEM cost: double-buffered native input + ~3 live f32 temps
    bytes_per_elem = 2 * itemsize + 3 * 4
    native_budget = 3 * 1024 * 1024
    ws_budget = vmem_cap // 4
    tb = min(native_budget // max(1, C * itemsize),
             ws_budget // max(1, C * bytes_per_elem))
    sublane = max(8, 32 // max(1, itemsize))   # 8 f32, 16 bf16, 32 int8/fp8
    tb = max(sublane, (tb // sublane) * sublane)
    tb = min(tb, 1024)
    if tb >= B:
        return B  # single tile spanning the full batch (always layout-legal)
    return tb


def label_smoothing_cross_entropy(preds, target, epsilon=EPSILON, block_rows=None):
    """preds: (B, C) float (any dtype); target: (B,) int. Returns scalar mean loss (f32)."""
    B, C = preds.shape
    itemsize = jnp.dtype(preds.dtype).itemsize

    try:
        vmem_cap = int(pltpu.get_tpu_info().vmem_capacity_bytes)
    except Exception:
        vmem_cap = 64 * 1024 * 1024  # conservative (v7x-sized) fallback

    TB = block_rows if block_rows is not None else _choose_block_rows(
        B, C, itemsize, vmem_cap)
    num_tiles = pl.cdiv(B, TB)
    B_pad = num_tiles * TB

    tgt2d = target.astype(jnp.int32).reshape(B, 1)
    if B_pad != B:
        # pad so the resident target can be sliced in full TB chunks in-bounds
        tgt2d = jnp.pad(tgt2d, ((0, B_pad - B), (0, 0)))

    # rough working-set estimate -> VMEM limit (<= VMEM/2, ~16-32 MiB)
    ws = 2 * TB * C * itemsize + 3 * TB * C * 4 + 4 * B_pad + 4 * num_tiles
    vmem_limit = int(min(vmem_cap // 2, max(ws + ws // 2, 16 * 1024 * 1024)))

    kernel = functools.partial(_ls_ce_kernel, n_rows=B, eps=float(epsilon))

    partials = pl.pallas_call(
        kernel,
        out_shape=jax.ShapeDtypeStruct((num_tiles, 1), jnp.float32),
        grid_spec=pltpu.PrefetchScalarGridSpec(
            num_scalar_prefetch=0,
            grid=(num_tiles,),
            in_specs=[
                pl.BlockSpec((TB, C), lambda i: (i, 0)),     # preds tile, native dtype
                pl.BlockSpec((B_pad, 1), lambda i: (0, 0)),  # resident target (copied once)
            ],
            out_specs=pl.BlockSpec((1, 1), lambda i: (i, 0)),
        ),
        compiler_params=pltpu.CompilerParams(
            # no carried state -> parallel batch axis (2 TCs on v7x)
            dimension_semantics=("parallel",),
            vmem_limit_bytes=vmem_limit,
        ),
        cost_estimate=pl.CostEstimate(
            flops=6 * B * C,
            transcendentals=B * C + B,
            bytes_accessed=B * C * itemsize + B_pad * 4 + num_tiles * 4,
        ),
    )(preds, tgt2d)

    return jnp.sum(partials) / jnp.float32(B)


def _reference(preds, target, eps=EPSILON):
    # pure-JAX reference mirroring the PyTorch module (computed in f32)
    log_preds = jax.nn.log_softmax(preds.astype(jnp.float32), axis=-1)
    loss = -jnp.sum(log_preds, axis=-1)
    nll = -jnp.take_along_axis(log_preds, target[:, None].astype(jnp.int32),
                               axis=-1)[:, 0]
    n = preds.shape[-1]
    out = (1.0 - eps) * nll + (eps / n) * loss
    return jnp.mean(out)


if __name__ == "__main__":
    key = jax.random.PRNGKey(0)
    k1, k2, k3, k4, k5, k6 = jax.random.split(key, 6)

    # --- test 1: small single-tile grid, float32 input ---
    B, C = 8, 32
    preds = jax.random.normal(k1, (B, C), dtype=jnp.float32)
    target = jax.random.randint(k2, (B,), 0, C, dtype=jnp.int32)
    loss = jax.block_until_ready(label_smoothing_cross_entropy(preds, target))
    ref = _reference(preds, target)
    assert jnp.allclose(loss, ref, atol=1e-5, rtol=1e-5), (loss, ref)

    # --- test 2: multi-tile grid with a partial (masked) last tile, bf16 input ---
    B2, C2 = 200, 128
    preds2 = jax.random.normal(k3, (B2, C2), dtype=jnp.float32).astype(jnp.bfloat16)
    target2 = jax.random.randint(k4, (B2,), 0, C2, dtype=jnp.int32)
    loss2 = jax.block_until_ready(
        label_smoothing_cross_entropy(preds2, target2, block_rows=64))
    ref2 = _reference(preds2, target2)
    assert jnp.allclose(loss2, ref2, atol=1e-4, rtol=1e-4), (loss2, ref2)

    # --- test 3: C not a multiple of 128 (lane-padded tile), multi-tile f32 ---
    B3, C3 = 48, 100
    preds3 = jax.random.normal(k5, (B3, C3), dtype=jnp.float32)
    target3 = jax.random.randint(k6, (B3,), 0, C3, dtype=jnp.int32)
    loss3 = jax.block_until_ready(
        label_smoothing_cross_entropy(preds3, target3, block_rows=16))
    ref3 = _reference(preds3, target3)
    assert jnp.allclose(loss3, ref3, atol=1e-5, rtol=1e-5), (loss3, ref3)

    print("KERNEL_OK")
</pallas_src>

<mosaic_0001>
module attributes {stable_mosaic.version = 11 : i64} {
  func.func @_ls_ce_kernel(%arg0: i32, %arg1: memref<8x32xf32, #tpu.memory_space<vmem>>, %arg2: memref<8x1xi32, #tpu.memory_space<vmem>>, %arg3: memref<1x1xf32, #tpu.memory_space<vmem>>) attributes {dimension_semantics = [#tpu.dimension_semantics<parallel>], iteration_bounds = array<i64: 1>, scalar_prefetch = 0 : i64, scratch_operands = 0 : i64, tpu.core_type = #tpu.core_type<tc>, window_params = [{transform_indices = @transform_0, window_bounds = array<i64: 8, 32>}, {pipeline_mode = #tpu.pipeline_mode<synchronous>, transform_indices = @transform_1, window_bounds = array<i64: 8, 1>}, {transform_indices = @transform_2, window_bounds = array<i64: 1, 1>}]} {
    %c0 = arith.constant 0 : index
    %c0_0 = arith.constant 0 : index
    %0 = vector.load %arg1[%c0, %c0_0] : memref<8x32xf32, #tpu.memory_space<vmem>>, vector<8x32xf32>
    %cst = arith.constant dense<0xFF800000> : vector<8xf32>
    %1 = vector.multi_reduction <maximumf>, %0, %cst [1] : vector<8x32xf32> to vector<8xf32>
    %2 = vector.shape_cast %1 : vector<8xf32> to vector<8x1xf32>
    %cst_1 = arith.constant dense<0.000000e+00> : vector<8xf32>
    %3 = vector.multi_reduction <add>, %0, %cst_1 [1] : vector<8x32xf32> to vector<8xf32>
    %4 = vector.shape_cast %3 : vector<8xf32> to vector<8x1xf32>
    %c8_i32 = arith.constant 8 : i32
    %5 = arith.muli %arg0, %c8_i32 : i32
    %6 = tpu.assume_multiple %5, 8 : i32
    %7 = arith.index_cast %6 : i32 to index
    %c0_2 = arith.constant 0 : index
    %8 = vector.load %arg2[%7, %c0_2] : memref<8x1xi32, #tpu.memory_space<vmem>>, vector<8x1xi32>
    %9 = tpu.iota {dimensions = array<i32: 1>} : vector<1x32xi32>
    %10 = vector.broadcast %9 : vector<1x32xi32> to vector<8x32xi32>
    %11 = vector.broadcast %8 : vector<8x1xi32> to vector<8x32xi32>
    %12 = arith.cmpi eq, %10, %11 : vector<8x32xi32>
    %cst_3 = arith.constant 0.000000e+00 : f32
    %13 = vector.broadcast %cst_3 : f32 to vector<8x32xf32>
    %14 = arith.select %12, %0, %13 : vector<8x32xi1>, vector<8x32xf32>
    %cst_4 = arith.constant dense<0.000000e+00> : vector<8xf32>
    %15 = vector.multi_reduction <add>, %14, %cst_4 [1] : vector<8x32xf32> to vector<8xf32>
    %16 = vector.shape_cast %15 : vector<8xf32> to vector<8x1xf32>
    %17 = vector.broadcast %2 : vector<8x1xf32> to vector<8x32xf32>
    %18 = arith.subf %0, %17 : vector<8x32xf32>
    %19 = math.exp %18 : vector<8x32xf32>
    %cst_5 = arith.constant dense<0.000000e+00> : vector<8xf32>
    %20 = vector.multi_reduction <add>, %19, %cst_5 [1] : vector<8x32xf32> to vector<8xf32>
    %21 = vector.shape_cast %20 : vector<8xf32> to vector<8x1xf32>
    %22 = math.log %21 : vector<8x1xf32>
    %23 = arith.addf %2, %22 : vector<8x1xf32>
    %24 = arith.subf %23, %16 : vector<8x1xf32>
    %cst_6 = arith.constant 3.200000e+01 : f32
    %25 = vector.broadcast %cst_6 : f32 to vector<8x1xf32>
    %26 = arith.mulf %25, %23 : vector<8x1xf32>
    %27 = arith.subf %26, %4 : vector<8x1xf32>
    %cst_7 = arith.constant 0.899999976 : f32
    %28 = vector.broadcast %cst_7 : f32 to vector<8x1xf32>
    %29 = arith.mulf %28, %24 : vector<8x1xf32>
    %cst_8 = arith.constant 3.125000e-03 : f32
    %30 = vector.broadcast %cst_8 : f32 to vector<8x1xf32>
    %31 = arith.mulf %30, %27 : vector<8x1xf32>
    %32 = arith.addf %29, %31 : vector<8x1xf32>
    %c8_i32_9 = arith.constant 8 : i32
    %33 = arith.muli %arg0, %c8_i32_9 : i32
    %34 = tpu.iota {dimensions = array<i32: 0>} : vector<8x1xi32>
    %35 = vector.broadcast %33 : i32 to vector<8x1xi32>
    %36 = arith.addi %35, %34 : vector<8x1xi32>
    %c8_i32_10 = arith.constant 8 : i32
    %37 = vector.broadcast %c8_i32_10 : i32 to vector<8x1xi32>
    %38 = arith.cmpi slt, %36, %37 : vector<8x1xi32>
    %cst_11 = arith.constant 0.000000e+00 : f32
    %39 = vector.broadcast %cst_11 : f32 to vector<8x1xf32>
    %40 = arith.select %38, %32, %39 : vector<8x1xi1>, vector<8x1xf32>
    %41 = vector.shape_cast %40 : vector<8x1xf32> to vector<1x8x1xf32>
    %cst_12 = arith.constant dense<0.000000e+00> : vector<1xf32>
    %42 = vector.multi_reduction <add>, %41, %cst_12 [1, 2] : vector<1x8x1xf32> to vector<1xf32>
    %43 = vector.shape_cast %42 : vector<1xf32> to vector<1x1x1xf32>
    %44 = vector.extract %43[0, 0, 0] : f32 from vector<1x1x1xf32>
    %45 = vector.broadcast %44 : f32 to vector<1x1xf32>
    %c0_13 = arith.constant 0 : index
    %c0_14 = arith.constant 0 : index
    %46 = vector.load %arg3[%c0_13, %c0_14] : memref<1x1xf32, #tpu.memory_space<vmem>>, vector<1x1xf32>
    tpu.vector_store %arg3[%c0_13, %c0_14], %45 {strides = array<i32>} : memref<1x1xf32, #tpu.memory_space<vmem>>, vector<1x1xf32>,
    return
  }
  func.func @transform_0(%arg0: i32) -> (i32, i32) {
    %c0_i32 = arith.constant 0 : i32
    %c0_i32_0 = arith.constant 0 : i32
    return %arg0, %c0_i32 : i32, i32
  }
  func.func @transform_1(%arg0: i32) -> (i32, i32) {
    %c0_i32 = arith.constant 0 : i32
    %c0_i32_0 = arith.constant 0 : i32
    %c0_i32_1 = arith.constant 0 : i32
    return %c0_i32, %c0_i32_0 : i32, i32
  }
  func.func @transform_2(%arg0: i32) -> (i32, i32) {
    %c0_i32 = arith.constant 0 : i32
    %c0_i32_0 = arith.constant 0 : i32
    return %arg0, %c0_i32 : i32, i32
  }
}

</mosaic_0001>

<bundles_post_ra>
// kernel: tpu_custom_call.1
= control target key start
LH: loop header
LB: loop body
LE: loop exit
PB: predicated region body
PF: predicated region fallthrough
CT: control target
= control target key end

     0   :  { %vm13_vm0 = vcmask 261120   ;;  %s154_s0 = inlined_call_operand.vmem [shape: f32[8,32], index: 0, kind: input, shape index: {}]   ;;  %s155_s1 = inlined_call_operand.vmem [shape: s32[8,1], index: 1, kind: input, shape index: {}]   ;;  %s156_s2 = inlined_call_operand.hbm [shape: f32[1,1], index: 2, kind: output, shape index: {}]  }
   0x1   :  { %v12_v0 = vld [vmem:[%s154_s0] sm:$0xff] }
   0x2   :  { %7 = vsyncpa [#allocation3], 0  ;;  %v14_v1 = vsel %vm13_vm0, %v12_v0, -inf  ;;  %v115_v2 = vmov 0   ;;  %v22_v3 = vld [vmem:[%s155_s1] sm:$0xff]  ;;  %v23_v7 = vlaneseq  ;;  %v17_v12 = vsel %vm13_vm0, %v12_v0, 0.0 }
   0x3   :  { %86 = vset.pattern.permute.xlu0 %v115_v2  ;;  %vm54_vm2 = vcmask 7168   ;;  %s116_s0 = smov [#allocation2]   ;;  %vm66_vm3 = vcmask 0  }
   0x4   :  { %15 = vmax.xlane.f32.xlu0 %v14_v1  ;;  %v24_v8 = vand.u32 127, %v23_v7  ;;  %s74_s1 = sshll.u32 %s116_s0, 4  ;;  %s75_s1 = int_to_ptr.vmem [resolvable:$true] %s74_s1 }
   0x5   :  { %s91_s14 = scalar_lea.vmem %s75_s1, 16  ;;  %s95_s15 = scalar_lea.vmem %s75_s1, 32 }
   0x6   :  { %p92_p0 = scmp.ne.s32.totalorder %s75_s1, %s91_s14  ;;  %p96_p1 = scmp.lt.s32.totalorder %s75_s1, %s75_s1 }
   0x7   :  { %p97_p2 = scmp.lt.s32.totalorder %s95_s15, %s91_s14 }
   0x9   :  { %p98_p3 = por %p97_p2, %p96_p1 }
   0xb   :  { %p99_p4 = pnand %p98_p3, %p92_p0 }
  0x1a   :  { %26 = vperm.xlu0 %86, %v22_v3  }
  0x91   :  { %v16_v4 = vpop.xlane.xlu0 %15 }
  0x92   :  { %v33_v5 = vsub.f32 %v12_v0, %v16_v4 }
  0x94   :  { %v34_v6 = vmul.f32 1.442695, %v33_v5 }
  0x96   :  { %87 = vpow2.f32 %v34_v6 }
  0x99   :  { %v27_v9 = vpop.permute.xlu0 %26 }
  0x9a   :  { %vm28_vm1 = vcmp.eq.s32.totalorder %v24_v8, %v27_v9 }
  0x9b   :  { %v29_v13 = vsel %vm28_vm1, %v12_v0, 0.0 }
  0x9c   :  { %v30_v14 = vsel %vm13_vm0, %v29_v13, 0.0 }
  0xa0   :  { %v88_v10 = vpop.eup %87 }
  0xa1   :  { %v36_v11 = vsel %vm13_vm0, %v88_v10, 0.0 }
  0xa2   :  { %37 = vadd.xlane.f32.xlu1 %v36_v11 }
  0xa6   :  { %18 = vadd.xlane.f32.xlu1 %v17_v12 }
  0xaa   :  { %31 = vadd.xlane.f32.xlu1 %v30_v14 }
 0x12f   :  { %v38_v15 = vpop.xlane.xlu1 %37 }
 0x130   :  { %89 = vlog2.f32 %v38_v15 }
 0x133   :  { %v19_v16 = vpop.xlane.xlu1 %18 }
 0x137   :  { %v32_v19 = vpop.xlane.xlu1 %31 }
 0x13a   :  { %v90_v17 = vpop.eup %89 }
 0x13b   :  { %v40_v18 = vmul.f32 0.6931472, %v90_v17 }
 0x13d   :  { %v41_v20 = vadd.f32 %v40_v18, %v16_v4 }
 0x13f   :  { %v43_v21 = vmul.f32 32.0, %v41_v20  ;;  %v42_v22 = vsub.f32 %v41_v20, %v32_v19 }
 0x141   :  { %v44_v23 = vsub.f32 %v43_v21, %v19_v16  ;;  %v45_v25 = vmul.f32 0.9, %v42_v22 }
 0x143   :  { %v46_v24 = vmul.f32 0.003125, %v44_v23 }
 0x145   :  { %v47_v26 = vadd.f32 %v46_v24, %v45_v25 }
 0x147   :  { %v55_v27 = vsel %vm54_vm2, %v47_v26, 0.0 }
 0x148   :  { %56 = vadd.xlane.f32.xlu1 %v55_v27 }
 0x1d5   :  { %v57_v28 = vpop.xlane.xlu1 %56 }
 0x1d6   :  { %v58_v29 = vrot.slane %v57_v28, 4 }
 0x1d8   :  { %v59_v30 = vadd.f32 %v58_v29, %v57_v28 }
 0x1da   :  { %v60_v31 = vrot.slane %v59_v30, 2 }
 0x1dc   :  { %v61_v32 = vadd.f32 %v60_v31, %v59_v30 }
 0x1de   :  { %v62_v33 = vrot.slane %v61_v32, 1 }
 0x1e0   :  { %v63_v34 = vadd.f32 %v62_v33, %v61_v32 }
 0x1e2   :  { %82 = vpush %v63_v34 }
 0x213   :  { %s83_s13 = spop %82 }
 0x214   :  { %v65_v35 = vstv %s83_s13 }
 0x215   :  { %67 = vst.msk [vmem:[#allocation2] sm:$0x1] %vm66_vm3, %v65_v35 }
 0x216   :  { %102 = shalt.err (!%p99_p4)
}
 0x217   :  { %s103_s18 = scalar_lea.hbm %s156_s2, 16 }
 0x218   :  { %p104_p5 = scmp.ne.s32.totalorder %s156_s2, %s103_s18  ;;  %p107_p6 = scmp.lt.u32.totalorder %s103_s18, %s156_s2 }
 0x21a   :  { %p109_p7 = pnand %p107_p6, %p104_p5 }
 0x21c   :  { %112 = shalt.err (!%p109_p7)
}
 0x21d   :  { %77 = dma.vmem_to_hbm [thread:$0]  %s75_s1, 16, %s156_s2, [#allocation3]  }
 0x21e   :  { %113 = dma.done.wait [#allocation3], 16  }
 0x21f   :  { %114 = vsyncadd [#allocation3], 4294967280 }
 0x220   :  { %81 = vsyncpa [#allocation3], 1 }

</bundles_post_ra>
